<compile_context>
chip_gen: v6e
topology: v6e:2x2x1
jax: 0.10.0
libtpu: 0.0.40
codegen_flags: <defaults>
</compile_context>

<pallas_src>
import functools

import jax
import jax.numpy as jnp
from jax import lax
from jax.experimental import pallas as pl
from jax.experimental.pallas import tpu as pltpu


# ----------------------------------------------------------------------------
# Tiling helper: largest tile <= desired that is `align`-aligned and divides dim,
# otherwise the full dim (full-extent blocks always satisfy the (8,128) rule).
# ----------------------------------------------------------------------------
def _pick_tile(dim, desired, align):
    t = min(desired, dim)
    t = (t // align) * align
    while t >= align:
        if dim % t == 0:
            return t
        t -= align
    return dim


# ----------------------------------------------------------------------------
# Kernel 1: tiled matmul (no bias) with K-accumulation in a VMEM f32 scratch.
#   y = x @ w          x: (M, K), w: (K, N)
# ----------------------------------------------------------------------------
def _matmul_kernel(x_ref, w_ref, o_ref, acc_ref):
    @pl.when(pl.program_id(2) == 0)
    def _init():
        acc_ref[...] = jnp.zeros_like(acc_ref)

    acc_ref[...] += jnp.dot(
        x_ref[...], w_ref[...], preferred_element_type=jnp.float32
    )

    @pl.when(pl.program_id(2) == pl.num_programs(2) - 1)
    def _store():
        o_ref[...] = acc_ref[...].astype(o_ref.dtype)


def pallas_matmul(x, w, *, tm=256, tn=256, tk=512):
    M, K = x.shape
    K2, N = w.shape
    assert K == K2
    tm = _pick_tile(M, tm, 8)
    tn = _pick_tile(N, tn, 128)
    tk = _pick_tile(K, tk, 128)
    grid = (M // tm, N // tn, K // tk)
    return pl.pallas_call(
        _matmul_kernel,
        out_shape=jax.ShapeDtypeStruct((M, N), x.dtype),
        grid_spec=pltpu.PrefetchScalarGridSpec(
            num_scalar_prefetch=0,
            grid=grid,
            in_specs=[
                pl.BlockSpec((tm, tk), lambda i, j, k: (i, k)),
                pl.BlockSpec((tk, tn), lambda i, j, k: (k, j)),
            ],
            out_specs=pl.BlockSpec((tm, tn), lambda i, j, k: (i, j)),
            scratch_shapes=[pltpu.VMEM((tm, tn), jnp.float32)],
        ),
        compiler_params=pltpu.CompilerParams(
            dimension_semantics=("parallel", "parallel", "arbitrary"),
            vmem_limit_bytes=32 * 1024 * 1024,
        ),
    )(x, w)


# ----------------------------------------------------------------------------
# Kernel 2: attention core per (batch, head, q-tile):
#   logits = (q * scale) @ k^T + bias        (bias = mask * -1e9 * scale, precomputed)
#   scores = softmax(logits) ; embeds = scores @ v
# ----------------------------------------------------------------------------
def _attn_kernel(q_ref, k_ref, v_ref, bias_ref, emb_ref, scores_ref, *, scale):
    k = k_ref[0, 0]                                           # (Sk, hd)
    v = v_ref[0, 0]                                           # (Sk, hd)
    # Fold the softmax scale into the small (tq, hd) q tile instead of the
    # (tq, Sk) logits tile.
    q = (q_ref[0, 0].astype(jnp.float32) * scale).astype(k.dtype)   # (tq, hd)
    bias = bias_ref[0, 0]                                     # (tq, Sk), already scaled

    # Contract the minor dim of both operands -> no materialized k.T.
    logits = lax.dot_general(
        q, k,
        dimension_numbers=(((1,), (1,)), ((), ())),
        preferred_element_type=jnp.float32,
    )
    logits = logits + bias

    row_max = jnp.max(logits, axis=-1, keepdims=True)
    p = jnp.exp(logits - row_max)
    denom = jnp.sum(p, axis=-1, keepdims=True)
    scores = p * pl.reciprocal(denom, approx=True)            # EUP, not VALU divides

    scores_ref[0, 0] = scores.astype(scores_ref.dtype)
    emb_ref[0, 0] = jnp.dot(
        scores.astype(v.dtype), v, preferred_element_type=jnp.float32
    ).astype(emb_ref.dtype)


def pallas_attention(q, k, v, bias, *, scale, tq=256):
    # q: (B, H, Sq, hd), k/v: (B, H, Sk, hd), bias: (Bm, Hm, Sq, Sk) with Bm in {1,B},
    # Hm in {1,H}; bias is additive and already includes the -1e9 * scale factor.
    B, H, Sq, hd = q.shape
    Sk = k.shape[2]
    Bm, Hm = bias.shape[0], bias.shape[1]
    tq = _pick_tile(Sq, tq, 8)
    grid = (B, H, Sq // tq)

    def bias_index(b, h, qi, _Bm=Bm, _Hm=Hm):
        return (b if _Bm > 1 else 0, h if _Hm > 1 else 0, qi, 0)

    kernel = functools.partial(_attn_kernel, scale=scale)
    emb, scores = pl.pallas_call(
        kernel,
        out_shape=(
            jax.ShapeDtypeStruct((B, H, Sq, hd), q.dtype),
            jax.ShapeDtypeStruct((B, H, Sq, Sk), jnp.float32),
        ),
        grid_spec=pltpu.PrefetchScalarGridSpec(
            num_scalar_prefetch=0,
            grid=grid,
            in_specs=[
                pl.BlockSpec((1, 1, tq, hd), lambda b, h, qi: (b, h, qi, 0)),
                pl.BlockSpec((1, 1, Sk, hd), lambda b, h, qi: (b, h, 0, 0)),
                pl.BlockSpec((1, 1, Sk, hd), lambda b, h, qi: (b, h, 0, 0)),
                pl.BlockSpec((1, 1, tq, Sk), bias_index),
            ],
            out_specs=[
                pl.BlockSpec((1, 1, tq, hd), lambda b, h, qi: (b, h, qi, 0)),
                pl.BlockSpec((1, 1, tq, Sk), lambda b, h, qi: (b, h, qi, 0)),
            ],
        ),
        compiler_params=pltpu.CompilerParams(
            dimension_semantics=("parallel", "parallel", "parallel"),
            vmem_limit_bytes=32 * 1024 * 1024,
        ),
    )(q, k, v, bias)
    return emb, scores


# ----------------------------------------------------------------------------
# Module wrapper (glue in plain JAX: param init, head split/merge, fused QKV).
# ----------------------------------------------------------------------------
def init_mha_params(key, d_model):
    ks = jax.random.split(key, 4)
    bound = 1.0 / (d_model ** 0.5)
    mk = lambda k: jax.random.uniform(
        k, (d_model, d_model), jnp.float32, minval=-bound, maxval=bound
    )
    return {"Wq": mk(ks[0]), "Wk": mk(ks[1]), "Wv": mk(ks[2]), "Wo": mk(ks[3])}


def _split_heads(x, num_heads, head_dim):
    b, s, _ = x.shape
    return x.reshape(b, s, num_heads, head_dim).transpose(0, 2, 1, 3)


def multi_head_attention(params, querys, keys, values, num_heads,
                         attn_mask=None, compute_dtype=None):
    """Matches the PyTorch module: returns (hidden_states, attn_scores).

    compute_dtype: optionally cast MXU inputs (activations/weights/q/k/v) to e.g.
    bfloat16 for the matmuls (accumulation stays f32).  None -> keep input dtype.
    """
    B, Sq, D = querys.shape
    Sk = keys.shape[1]
    assert D % num_heads == 0
    hd = D // num_heads
    scale = 1.0 / (hd ** 0.5)

    cast = (lambda a: a.astype(compute_dtype)) if compute_dtype is not None else (lambda a: a)

    if (querys is keys) and (keys is values):
        # Self-attention: fused QKV projection, one pass over the activation.
        w_qkv_t = jnp.concatenate(
            [params["Wq"].T, params["Wk"].T, params["Wv"].T], axis=1)   # (D, 3D)
        qkv = pallas_matmul(cast(querys.reshape(B * Sq, D)), cast(w_qkv_t))
        qkv = qkv.reshape(B, Sq, 3, num_heads, hd)
        q = qkv[:, :, 0].transpose(0, 2, 1, 3)   # (B, H, Sq, hd)
        k = qkv[:, :, 1].transpose(0, 2, 1, 3)   # (B, H, Sk, hd)
        v = qkv[:, :, 2].transpose(0, 2, 1, 3)
    else:
        q = _split_heads(
            pallas_matmul(cast(querys.reshape(B * Sq, D)), cast(params["Wq"].T)
                          ).reshape(B, Sq, D), num_heads, hd)
        k = _split_heads(
            pallas_matmul(cast(keys.reshape(B * Sk, D)), cast(params["Wk"].T)
                          ).reshape(B, Sk, D), num_heads, hd)
        v = _split_heads(
            pallas_matmul(cast(values.reshape(B * Sk, D)), cast(params["Wv"].T)
                          ).reshape(B, Sk, D), num_heads, hd)

    # Additive mask bias, kept un-broadcast over heads (and batch if possible);
    # fold the softmax scale in here so the kernel matches softmax((qk + m*-1e9)/sqrt(hd))
    # exactly while only scaling the small q tile in-kernel.
    if attn_mask is None:
        bias = jnp.zeros((1, 1, Sq, Sk), jnp.float32)
    else:
        bias = attn_mask[:, :, :Sq, :Sk].astype(jnp.float32) * (-1e9 * scale)

    embeds, attn_scores = pallas_attention(q, k, v, bias, scale=scale)

    # merge heads: (B, H, Sq, hd) -> (B*Sq, D), then output projection.
    merged = embeds.transpose(0, 2, 1, 3).reshape(B * Sq, D)
    hidden = pallas_matmul(merged, cast(params["Wo"].T)).reshape(B, Sq, D)
    return hidden, attn_scores


# ----------------------------------------------------------------------------
# Reference (pure JAX) for a sanity check.
# ----------------------------------------------------------------------------
def reference_mha(params, querys, keys, values, num_heads, attn_mask=None):
    B, Sq, D = querys.shape
    Sk = keys.shape[1]
    hd = D // num_heads
    sh = lambda x: x.reshape(x.shape[0], x.shape[1], num_heads, hd).transpose(0, 2, 1, 3)
    q = sh(querys @ params["Wq"].T)
    k = sh(keys @ params["Wk"].T)
    v = sh(values @ params["Wv"].T)
    logits = jnp.einsum("bhqd,bhkd->bhqk", q, k)
    if attn_mask is not None:
        logits = logits + attn_mask[:, :, :Sq, :Sk].astype(logits.dtype) * (-1e9)
    scores = jax.nn.softmax(logits / hd ** 0.5, axis=-1)
    emb = jnp.einsum("bhqk,bhkd->bhqd", scores, v)
    emb = emb.transpose(0, 2, 1, 3).reshape(B, Sq, D)
    return emb @ params["Wo"].T, scores


if __name__ == "__main__":
    key = jax.random.PRNGKey(0)
    B, S, D, H = 2, 8, 32, 4  # batch, seq, d_model, num_heads

    k_param, k_x, k_k, k_v = jax.random.split(key, 4)
    params = init_mha_params(k_param, D)

    x = jax.random.normal(k_x, (B, S, D), jnp.float32)
    keys_in = jax.random.normal(k_k, (B, S, D), jnp.float32)
    vals_in = jax.random.normal(k_v, (B, S, D), jnp.float32)

    # causal mask: 1 where attention is disallowed (matches "mask * -1e9" convention)
    causal = 1.0 - jnp.tril(jnp.ones((S, S), jnp.float32))
    attn_mask = jnp.broadcast_to(causal[None, None], (B, 1, S, S))

    # 1) self-attention (fused QKV path), with causal mask
    hidden, scores = multi_head_attention(params, x, x, x, H, attn_mask)
    jax.block_until_ready((hidden, scores))
    ref_hidden, ref_scores = reference_mha(params, x, x, x, H, attn_mask)
    assert jnp.allclose(hidden, ref_hidden, atol=2e-3, rtol=2e-3)
    assert jnp.allclose(scores, ref_scores, atol=1e-3, rtol=1e-3)

    # 2) cross-attention (separate projection path), no mask
    hidden2, scores2 = multi_head_attention(params, x, keys_in, vals_in, H, None)
    jax.block_until_ready((hidden2, scores2))
    ref_hidden2, ref_scores2 = reference_mha(params, x, keys_in, vals_in, H, None)
    assert jnp.allclose(hidden2, ref_hidden2, atol=2e-3, rtol=2e-3)
    assert jnp.allclose(scores2, ref_scores2, atol=1e-3, rtol=1e-3)

    # 3) bf16-MXU-input path (smoke test; f32 accumulation, loose tolerance)
    hidden3, scores3 = multi_head_attention(
        params, x, x, x, H, attn_mask, compute_dtype=jnp.bfloat16)
    jax.block_until_ready((hidden3, scores3))
    assert bool(jnp.all(jnp.isfinite(hidden3.astype(jnp.float32))))
    assert jnp.allclose(hidden3.astype(jnp.float32), ref_hidden, atol=1e-1, rtol=1e-1)

    print("KERNEL_OK")
</pallas_src>

<mosaic_0001>
module attributes {stable_mosaic.version = 11 : i64} {
  func.func @_matmul_kernel(%arg0: i32, %arg1: i32, %arg2: i32, %arg3: memref<16x32xf32, #tpu.memory_space<vmem>>, %arg4: memref<32x96xf32, #tpu.memory_space<vmem>>, %arg5: memref<16x96xf32, #tpu.memory_space<vmem>>, %arg6: memref<16x96xf32, #tpu.memory_space<vmem>>) attributes {dimension_semantics = [#tpu.dimension_semantics<parallel>, #tpu.dimension_semantics<parallel>, #tpu.dimension_semantics<arbitrary>], iteration_bounds = array<i64: 1, 1, 1>, scalar_prefetch = 0 : i64, scratch_operands = 1 : i64, tpu.core_type = #tpu.core_type<tc>, window_params = [{transform_indices = @transform_0, window_bounds = array<i64: 16, 32>}, {transform_indices = @transform_1, window_bounds = array<i64: 32, 96>}, {transform_indices = @transform_2, window_bounds = array<i64: 16, 96>}]} {
    %c0_i32 = arith.constant 0 : i32
    %0 = arith.cmpi eq, %arg2, %c0_i32 : i32
    %1 = arith.extui %0 : i1 to i32
    %c0_i32_0 = arith.constant 0 : i32
    %2 = arith.cmpi ne, %1, %c0_i32_0 : i32
    scf.if %2 {
      %cst_10 = arith.constant 0.000000e+00 : f32
      %12 = vector.broadcast %cst_10 : f32 to vector<16x96xf32>
      %c0_11 = arith.constant 0 : index
      %c0_12 = arith.constant 0 : index
      %13 = vector.load %arg6[%c0_11, %c0_12] : memref<16x96xf32, #tpu.memory_space<vmem>>, vector<16x96xf32>
      tpu.vector_store %arg6[%c0_11, %c0_12], %12 {strides = array<i32>} : memref<16x96xf32, #tpu.memory_space<vmem>>, vector<16x96xf32>,
    } else {
    }
    %c0 = arith.constant 0 : index
    %c0_1 = arith.constant 0 : index
    %3 = vector.load %arg6[%c0, %c0_1] : memref<16x96xf32, #tpu.memory_space<vmem>>, vector<16x96xf32>
    %c0_2 = arith.constant 0 : index
    %c0_3 = arith.constant 0 : index
    %4 = vector.load %arg3[%c0_2, %c0_3] : memref<16x32xf32, #tpu.memory_space<vmem>>, vector<16x32xf32>
    %c0_4 = arith.constant 0 : index
    %c0_5 = arith.constant 0 : index
    %5 = vector.load %arg4[%c0_4, %c0_5] : memref<32x96xf32, #tpu.memory_space<vmem>>, vector<32x96xf32>
    %cst = arith.constant dense<0.000000e+00> : vector<16x96xf32>
    %6 = tpu.matmul %4, %5, %cst {dimension_numbers = #tpu.dot_dimension_numbers<[1], [0], [0], [1], [0, 0, 1, 1], [], []>} : vector<16x32xf32>, vector<32x96xf32>, vector<16x96xf32> -> vector<16x96xf32>
    %7 = arith.addf %3, %6 : vector<16x96xf32>
    %c0_6 = arith.constant 0 : index
    %c0_7 = arith.constant 0 : index
    %8 = vector.load %arg6[%c0_6, %c0_7] : memref<16x96xf32, #tpu.memory_space<vmem>>, vector<16x96xf32>
    tpu.vector_store %arg6[%c0_6, %c0_7], %7 {strides = array<i32>} : memref<16x96xf32, #tpu.memory_space<vmem>>, vector<16x96xf32>,
    %c0_i32_8 = arith.constant 0 : i32
    %9 = arith.cmpi eq, %arg2, %c0_i32_8 : i32
    %10 = arith.extui %9 : i1 to i32
    %c0_i32_9 = arith.constant 0 : i32
    %11 = arith.cmpi ne, %10, %c0_i32_9 : i32
    scf.if %11 {
      %c0_10 = arith.constant 0 : index
      %c0_11 = arith.constant 0 : index
      %12 = vector.load %arg6[%c0_10, %c0_11] : memref<16x96xf32, #tpu.memory_space<vmem>>, vector<16x96xf32>
      %c0_12 = arith.constant 0 : index
      %c0_13 = arith.constant 0 : index
      %13 = vector.load %arg5[%c0_12, %c0_13] : memref<16x96xf32, #tpu.memory_space<vmem>>, vector<16x96xf32>
      tpu.vector_store %arg5[%c0_12, %c0_13], %12 {strides = array<i32>} : memref<16x96xf32, #tpu.memory_space<vmem>>, vector<16x96xf32>,
    } else {
    }
    return
  }
  func.func @transform_0(%arg0: i32, %arg1: i32, %arg2: i32) -> (i32, i32) {
    %c0_i32 = arith.constant 0 : i32
    return %arg0, %arg2 : i32, i32
  }
  func.func @transform_1(%arg0: i32, %arg1: i32, %arg2: i32) -> (i32, i32) {
    %c0_i32 = arith.constant 0 : i32
    return %arg2, %arg1 : i32, i32
  }
  func.func @transform_2(%arg0: i32, %arg1: i32, %arg2: i32) -> (i32, i32) {
    %c0_i32 = arith.constant 0 : i32
    return %arg0, %arg1 : i32, i32
  }
}

</mosaic_0001>

<bundles_post_ra>
// kernel: tpu_custom_call.1
= control target key start
LH: loop header
LB: loop body
LE: loop exit
PB: predicated region body
PF: predicated region fallthrough
CT: control target
= control target key end

     0   :  { %7 = vsyncpa [#allocation4], 0  ;;  %s305_s0 = inlined_call_operand.hbm [shape: f32[16,32], index: 0, kind: input, shape index: {}]   ;;  %s306_s1 = inlined_call_operand.hbm [shape: f32[32,96], index: 1, kind: input, shape index: {}]   ;;  %s307_s2 = inlined_call_operand.hbm [shape: f32[16,96], index: 2, kind: output, shape index: {}]  }
   0x1   :  { %8 = vsyncpa [#allocation7], 0 }
   0x2   :  { %9 = vsyncpa [#allocation5], 0  ;;  %s258_s9 = smov [#allocation3]  }
   0x3   :  { %s15_s10 = sshll.u32 %s258_s9, 4  ;;  %s16_s10 = int_to_ptr.vmem [resolvable:$true] %s15_s10 }
   0x4   :  { %s200_s11 = scalar_lea.vmem %s16_s10, 256  ;;  %p205_p1 = scmp.lt.s32.totalorder %s16_s10, %s16_s10 }
   0x5   :  { %p201_p0 = scmp.ne.s32.totalorder %s16_s10, %s200_s11  ;;  %p206_p2 = scmp.lt.s32.totalorder %s200_s11, %s200_s11 }
   0x7   :  { %p207_p3 = por %p206_p2, %p205_p1 }
   0x9   :  { %p208_p4 = pnand %p207_p3, %p201_p0 }
   0xb   :  { %211 = shalt.err (!%p208_p4)
}
   0xc   :  { %s259_s12 = smov 128   ;;  %s260_s13 = smov 8  }
   0xd   :  { %21 = dma.hbm_to_vmem [thread:$0]  %s305_s0, 256, %s16_s10, [#allocation4], %s259_s12, %s259_s12, %s260_s13  }
   0xe   :  { %s261_s16 = smov [#allocation6]  }
   0xf   :  { %s27_s17 = sshll.u32 %s261_s16, 4  ;;  %s28_s17 = int_to_ptr.vmem [resolvable:$true] %s27_s17 }
  0x10   :  { %s220_s18 = scalar_lea.vmem %s28_s17, 512  ;;  %p225_p6 = scmp.lt.s32.totalorder %s28_s17, %s28_s17 }
  0x11   :  { %p221_p5 = scmp.ne.s32.totalorder %s28_s17, %s220_s18  ;;  %p226_p7 = scmp.lt.s32.totalorder %s220_s18, %s220_s18 }
  0x13   :  { %p227_p8 = por %p226_p7, %p225_p6 }
  0x15   :  { %p228_p9 = pnand %p227_p8, %p221_p5 }
  0x17   :  { %231 = shalt.err (!%p228_p9)
}
  0x18   :  { %33 = dma.hbm_to_vmem [thread:$0]  %s306_s1, 512, %s28_s17, [#allocation7], %s259_s12, %s259_s12, %s260_s13  }
  0x19   :  { %252 = dma.done.wait [#allocation4], 256  }
  0x1a   :  { %253 = vsyncadd [#allocation4], 4294967040 }
  0x1b   :  { %254 = dma.done.wait [#allocation7], 512  }
  0x1c   :  { %255 = vsyncadd [#allocation7], 4294966784  ;;  %vm44_vm0 = vcmask 785408   ;;  %v262_v0 = vmov 0.0   ;;  %vm55_vm1 = vcmask 261120   ;;  %v54_v1 = vld [vmem:[#allocation6 + $0x18] sm:$0xff] }
  0x1d   :  { %46 = vst.msk [vmem:[#allocation2 + $0x8] sm:$0xff] %vm44_vm0, %v262_v0  ;;  %45 = vst.msk [vmem:[#allocation2] sm:$0xff] %vm44_vm0, %v262_v0  ;;  %v53_v2 = vld [vmem:[#allocation6 + $0x10] sm:$0xff]  ;;  %175 = vmatprep.subr.mxu0 %v54_v1  ;;  %v52_v4 = vld [vmem:[#allocation6 + $0x8] sm:$0xff]  ;;  %s263_s0 = smov [#allocation8]  }
  0x1e   :  { %v49_v3 = vld [vmem:[#allocation3] sm:$0xff]  ;;  %176 = vmatpush3.msra.mxu0 %v54_v1  ;;  %v51_v5 = vld [vmem:[#allocation6] sm:$0xff]  ;;  %v50_v6 = vld [vmem:[#allocation3 + $0x8] sm:$0xff]  ;;  %s154_s1 = sshll.u32 %s263_s0, 4  ;;  %s155_s1 = int_to_ptr.vmem [resolvable:$true] %s154_s1 }
  0x1f   :  { %183 = vmatprep.mubr.msk.f32.mxu0 %vm55_vm1, %v49_v3  ;;  %177 = vmatprep.subr.mxu0 %v53_v2  ;;  %s232_s21 = scalar_lea.vmem %s155_s1, 256  ;;  %p237_p11 = scmp.lt.s32.totalorder %s155_s1, %s155_s1 }
  0x20   :  { %178 = vmatpush3.msra.mxu0 %v53_v2  ;;  %p233_p10 = scmp.ne.s32.totalorder %s155_s1, %s232_s21  ;;  %p238_p12 = scmp.lt.s32.totalorder %s232_s21, %s232_s21 }
  0x21   :  { %179 = vmatprep.subr.mxu0 %v52_v4 }
  0x22   :  { %180 = vmatpush3.msra.mxu0 %v52_v4  ;;  %p239_p13 = por %p238_p12, %p237_p11 }
  0x23   :  { %181 = vmatprep.subr.mxu0 %v51_v5 }
  0x24   :  { %182 = vmatpush3.msra.mxu0 %v51_v5  ;;  %v48_v7 = vld [vmem:[#allocation2 + $0x8] sm:$0xff]  ;;  %v47_v9 = vld [vmem:[#allocation2] sm:$0xff]  ;;  %p240_p0 = pnand %p239_p13, %p233_p10 }
  0x25   :  { %184 = vmatmul.mubr.msk.f32.vlgmr.msra.gmra.mxu0 %vm55_vm1, %v50_v6 }
  0xe5   :  { %v185_v8 = vpop.f32.mrf.mxu0 }
  0xe6   :  { %v138_v10 = vadd.f32 %v185_v8, %v48_v7 }
  0xe7   :  { %v128_v11 = vpop.f32.mrf.mxu0 }
  0xe8   :  { %141 = vst.msk [vmem:[#allocation2 + $0x8] sm:$0xff] %vm44_vm0, %v138_v10  ;;  %v137_v12 = vadd.f32 %v128_v11, %v47_v9 }
  0xea   :  { %140 = vst.msk [vmem:[#allocation2] sm:$0xff] %vm44_vm0, %v137_v12 }
  0xef   :  { %v146_v13 = vld [vmem:[#allocation2 + $0x8] sm:$0xff] }
  0xf0   :  { %148 = vst.msk [vmem:[#allocation8 + $0x8] sm:$0xff] %vm44_vm0, %v146_v13 }
  0xf1   :  { %v145_v14 = vld [vmem:[#allocation2] sm:$0xff] }
  0xf2   :  { %147 = vst.msk [vmem:[#allocation8] sm:$0xff] %vm44_vm0, %v145_v14 }
  0xf3   :  { %243 = shalt.err (!%p240_p0)
}
  0xf4   :  { %160 = dma.vmem_to_hbm [thread:$0]  %s155_s1, 256, %s307_s2, [#allocation5], %s259_s12, %s259_s12, %s260_s13  }
  0xf5   :  { %256 = dma.done.wait [#allocation5], 256  }
  0xf6   :  { %257 = vsyncadd [#allocation5], 4294967040 }
  0xf7   :  { %164 = vsyncpa [#allocation4], 1 }
  0xf8   :  { %165 = vsyncpa [#allocation7], 1 }
  0xf9   :  { %166 = vsyncpa [#allocation5], 1 }

</bundles_post_ra>
